<compile_context>
chip_gen: v5e
topology: v5e:2x2
jax: 0.10.0
libtpu: 0.0.40
codegen_flags: <defaults>
</compile_context>

<pallas_src>
import jax
import jax.numpy as jnp
from jax import lax
from jax.experimental import pallas as pl
from jax.experimental.pallas import tpu as pltpu


# ----------------------------------------------------------------------------
# Entity-axis tile sizing.  Budget ~8 MiB of VMEM for the double-buffered
# bf16 emb tiles plus the double-buffered f32 output tiles, which leaves
# plenty of headroom even on v7x (64 MiB physical VMEM).
# ----------------------------------------------------------------------------
def _entity_tile(num_entities: int, rank: int, batch: int) -> int:
    if num_entities <= 128 or num_entities % 128 != 0:
        return num_entities                      # small / ragged table: one block
    per_tn = 2 * (2 * rank) + 2 * (2 * batch * 4)  # bf16 emb dbl-buf + 2 f32 out dbl-buf
    tn = (8 * 1024 * 1024) // max(per_tn, 1)
    tn = max(128, min(4096, (tn // 128) * 128))
    return min(tn, num_entities)


_DN_CONTRACT_LAST = (((1,), (1,)), ((), ()))     # contract rank axis of both operands


# ----------------------------------------------------------------------------
# Kernel 1: candidate scores for one query product:  (a * b) @ E_tile^T
#   score_objects(s, p)  -> a = E[s], b = R[p]
#   score_subjects(p, o) -> a = R[p], b = E[o]
# ----------------------------------------------------------------------------
def _candidate_scores_kernel(a_ref, b_ref, emb_ref, out_ref):
    emb = emb_ref[...]                                            # [TN, R] bf16
    q = (a_ref[...].astype(jnp.float32) *
         b_ref[...].astype(jnp.float32)).astype(emb.dtype)        # [B, R]
    out_ref[...] = lax.dot_general(                               # [B, TN] on MXU, f32 acc
        q, emb, _DN_CONTRACT_LAST, preferred_element_type=jnp.float32)


def candidate_scores(e_a, e_b, ent_emb, *, tile_n=None):
    B, R = e_a.shape
    N, _ = ent_emb.shape
    tn = tile_n or _entity_tile(N, R, B)
    return pl.pallas_call(
        _candidate_scores_kernel,
        out_shape=jax.ShapeDtypeStruct((B, N), jnp.float32),
        grid=(pl.cdiv(N, tn),),
        in_specs=[
            pl.BlockSpec((B, R), lambda j: (0, 0)),
            pl.BlockSpec((B, R), lambda j: (0, 0)),
            pl.BlockSpec((tn, R), lambda j: (j, 0)),
        ],
        out_specs=pl.BlockSpec((B, tn), lambda j: (0, j)),
        compiler_params=pltpu.CompilerParams(dimension_semantics=("parallel",)),
    )(e_a, e_b, ent_emb)


# ----------------------------------------------------------------------------
# Kernel 2: fused forward -- both (e_s*r_p)@E^T and (r_p*e_o)@E^T per emb tile
# (one pass over the entity table feeds two MXU matmuls).
# ----------------------------------------------------------------------------
def _fused_forward_kernel(es_ref, rp_ref, eo_ref, emb_ref, obj_ref, subj_ref):
    emb = emb_ref[...]                                            # [TN, R] bf16
    es = es_ref[...].astype(jnp.float32)
    rp = rp_ref[...].astype(jnp.float32)
    eo = eo_ref[...].astype(jnp.float32)
    q_obj = (es * rp).astype(emb.dtype)                           # [B, R]
    q_subj = (rp * eo).astype(emb.dtype)                          # [B, R]
    obj_ref[...] = lax.dot_general(
        q_obj, emb, _DN_CONTRACT_LAST, preferred_element_type=jnp.float32)
    subj_ref[...] = lax.dot_general(
        q_subj, emb, _DN_CONTRACT_LAST, preferred_element_type=jnp.float32)


def fused_candidate_scores(e_s, r_p, e_o, ent_emb, *, tile_n=None):
    B, R = e_s.shape
    N, _ = ent_emb.shape
    tn = tile_n or _entity_tile(N, R, B)
    qspec = pl.BlockSpec((B, R), lambda j: (0, 0))
    return pl.pallas_call(
        _fused_forward_kernel,
        out_shape=(jax.ShapeDtypeStruct((B, N), jnp.float32),
                   jax.ShapeDtypeStruct((B, N), jnp.float32)),
        grid=(pl.cdiv(N, tn),),
        in_specs=[qspec, qspec, qspec,
                  pl.BlockSpec((tn, R), lambda j: (j, 0))],
        out_specs=(pl.BlockSpec((B, tn), lambda j: (0, j)),
                   pl.BlockSpec((B, tn), lambda j: (0, j))),
        compiler_params=pltpu.CompilerParams(dimension_semantics=("parallel",)),
    )(e_s, r_p, e_o, ent_emb)


# ----------------------------------------------------------------------------
# Concrete "BaseModel" implementation (DistMult-style), bf16 embedding storage
# ----------------------------------------------------------------------------
class DistMultModel:
    def __init__(self, num_entities: int, num_predicates: int, rank: int, key,
                 entity_tile=None):
        k1, k2 = jax.random.split(key)
        self.entity_embeddings = (
            jax.random.normal(k1, (num_entities, rank), jnp.float32) * 0.1
        ).astype(jnp.bfloat16)
        self.predicate_embeddings = (
            jax.random.normal(k2, (num_predicates, rank), jnp.float32) * 0.1
        ).astype(jnp.bfloat16)
        self.entity_tile = entity_tile

    def score(self, s_idx, p_idx, o_idx):
        # TODO(synk): ~B*rank FLOPs is pallas_call-overhead dominated; the
        # per-review recommendation is to leave the triple score to XLA.
        e_s = self.entity_embeddings[s_idx].astype(jnp.float32)
        r_p = self.predicate_embeddings[p_idx].astype(jnp.float32)
        e_o = self.entity_embeddings[o_idx].astype(jnp.float32)
        return jnp.sum(e_s * r_p * e_o, axis=-1)

    def score_objects(self, s_idx, p_idx):
        e_s = self.entity_embeddings[s_idx]
        r_p = self.predicate_embeddings[p_idx]
        return candidate_scores(e_s, r_p, self.entity_embeddings,
                                tile_n=self.entity_tile)

    def score_subjects(self, p_idx, o_idx):
        r_p = self.predicate_embeddings[p_idx]
        e_o = self.entity_embeddings[o_idx]
        return candidate_scores(r_p, e_o, self.entity_embeddings,
                                tile_n=self.entity_tile)

    def forward(self, s_idx, p_idx, o_idx):
        # KBC training forward: (all-object scores, all-subject scores),
        # fused so the entity table is streamed from HBM only once.
        e_s = self.entity_embeddings[s_idx]
        r_p = self.predicate_embeddings[p_idx]
        e_o = self.entity_embeddings[o_idx]
        return fused_candidate_scores(e_s, r_p, e_o, self.entity_embeddings,
                                      tile_n=self.entity_tile)


if __name__ == "__main__":
    NUM_ENTITIES = 512
    NUM_PREDICATES = 16
    RANK = 32
    BATCH = 8
    TILE_N = 128          # force a multi-tile grid (4 entity tiles) in the demo

    key = jax.random.PRNGKey(0)
    k_model, k_s, k_p, k_o = jax.random.split(key, 4)

    model = DistMultModel(NUM_ENTITIES, NUM_PREDICATES, RANK, k_model,
                          entity_tile=TILE_N)

    s_idx = jax.random.randint(k_s, (BATCH,), 0, NUM_ENTITIES)
    p_idx = jax.random.randint(k_p, (BATCH,), 0, NUM_PREDICATES)
    o_idx = jax.random.randint(k_o, (BATCH,), 0, NUM_ENTITIES)

    triple = model.score(s_idx, p_idx, o_idx)                       # [B]
    obj_scores, subj_scores = model.forward(s_idx, p_idx, o_idx)    # [B, N] x2
    obj_only = model.score_objects(s_idx, p_idx)                    # [B, N]
    subj_only = model.score_subjects(p_idx, o_idx)                  # [B, N]

    jax.block_until_ready((triple, obj_scores, subj_scores, obj_only, subj_only))

    # ---- sanity check against plain-JAX reference (mirrors the bf16 path) ----
    E = model.entity_embeddings.astype(jnp.float32)
    P = model.predicate_embeddings.astype(jnp.float32)
    e_s = E[s_idx]
    r_p = P[p_idx]
    e_o = E[o_idx]
    ref_triple = jnp.sum(e_s * r_p * e_o, axis=-1)
    q_obj = (e_s * r_p).astype(jnp.bfloat16).astype(jnp.float32)
    q_subj = (r_p * e_o).astype(jnp.bfloat16).astype(jnp.float32)
    ref_obj = q_obj @ E.T
    ref_subj = q_subj @ E.T

    assert jnp.allclose(triple, ref_triple, atol=2e-3, rtol=2e-3)
    assert jnp.allclose(obj_scores, ref_obj, atol=2e-3, rtol=2e-3)
    assert jnp.allclose(subj_scores, ref_subj, atol=2e-3, rtol=2e-3)
    assert jnp.allclose(obj_only, ref_obj, atol=2e-3, rtol=2e-3)
    assert jnp.allclose(subj_only, ref_subj, atol=2e-3, rtol=2e-3)

    print("KERNEL_OK")
</pallas_src>

<mosaic_0001>
module attributes {stable_mosaic.version = 11 : i64} {
  func.func @_fused_forward_kernel(%arg0: i32, %arg1: memref<8x32xbf16, #tpu.memory_space<vmem>>, %arg2: memref<8x32xbf16, #tpu.memory_space<vmem>>, %arg3: memref<8x32xbf16, #tpu.memory_space<vmem>>, %arg4: memref<128x32xbf16, #tpu.memory_space<vmem>>, %arg5: memref<8x128xf32, #tpu.memory_space<vmem>>, %arg6: memref<8x128xf32, #tpu.memory_space<vmem>>) attributes {dimension_semantics = [#tpu.dimension_semantics<parallel>], iteration_bounds = array<i64: 4>, scalar_prefetch = 0 : i64, scratch_operands = 0 : i64, tpu.core_type = #tpu.core_type<tc>, window_params = [{pipeline_mode = #tpu.pipeline_mode<synchronous>, transform_indices = @transform_0, window_bounds = array<i64: 8, 32>}, {pipeline_mode = #tpu.pipeline_mode<synchronous>, transform_indices = @transform_1, window_bounds = array<i64: 8, 32>}, {pipeline_mode = #tpu.pipeline_mode<synchronous>, transform_indices = @transform_2, window_bounds = array<i64: 8, 32>}, {transform_indices = @transform_3, window_bounds = array<i64: 128, 32>}, {transform_indices = @transform_4, window_bounds = array<i64: 8, 128>}, {transform_indices = @transform_5, window_bounds = array<i64: 8, 128>}]} {
    %c0 = arith.constant 0 : index
    %c0_0 = arith.constant 0 : index
    %0 = vector.load %arg4[%c0, %c0_0] : memref<128x32xbf16, #tpu.memory_space<vmem>>, vector<128x32xbf16>
    %c0_1 = arith.constant 0 : index
    %c0_2 = arith.constant 0 : index
    %1 = vector.load %arg1[%c0_1, %c0_2] : memref<8x32xbf16, #tpu.memory_space<vmem>>, vector<8x32xbf16>
    %2 = arith.extf %1 : vector<8x32xbf16> to vector<8x32xf32>
    %c0_3 = arith.constant 0 : index
    %c0_4 = arith.constant 0 : index
    %3 = vector.load %arg2[%c0_3, %c0_4] : memref<8x32xbf16, #tpu.memory_space<vmem>>, vector<8x32xbf16>
    %4 = arith.extf %3 : vector<8x32xbf16> to vector<8x32xf32>
    %c0_5 = arith.constant 0 : index
    %c0_6 = arith.constant 0 : index
    %5 = vector.load %arg3[%c0_5, %c0_6] : memref<8x32xbf16, #tpu.memory_space<vmem>>, vector<8x32xbf16>
    %6 = arith.extf %5 : vector<8x32xbf16> to vector<8x32xf32>
    %7 = arith.mulf %2, %4 : vector<8x32xf32>
    %8 = arith.truncf %7 : vector<8x32xf32> to vector<8x32xbf16>
    %9 = arith.mulf %4, %6 : vector<8x32xf32>
    %10 = arith.truncf %9 : vector<8x32xf32> to vector<8x32xbf16>
    %cst = arith.constant dense<0.000000e+00> : vector<8x128xf32>
    %11 = tpu.matmul %8, %0, %cst {dimension_numbers = #tpu.dot_dimension_numbers<[1], [1], [0], [0], [0, 0, 1, 0], [], []>} : vector<8x32xbf16>, vector<128x32xbf16>, vector<8x128xf32> -> vector<8x128xf32>
    %c0_7 = arith.constant 0 : index
    %c0_8 = arith.constant 0 : index
    %12 = vector.load %arg5[%c0_7, %c0_8] : memref<8x128xf32, #tpu.memory_space<vmem>>, vector<8x128xf32>
    tpu.vector_store %arg5[%c0_7, %c0_8], %11 {strides = array<i32>} : memref<8x128xf32, #tpu.memory_space<vmem>>, vector<8x128xf32>,
    %cst_9 = arith.constant dense<0.000000e+00> : vector<8x128xf32>
    %13 = tpu.matmul %10, %0, %cst_9 {dimension_numbers = #tpu.dot_dimension_numbers<[1], [1], [0], [0], [0, 0, 1, 0], [], []>} : vector<8x32xbf16>, vector<128x32xbf16>, vector<8x128xf32> -> vector<8x128xf32>
    %c0_10 = arith.constant 0 : index
    %c0_11 = arith.constant 0 : index
    %14 = vector.load %arg6[%c0_10, %c0_11] : memref<8x128xf32, #tpu.memory_space<vmem>>, vector<8x128xf32>
    tpu.vector_store %arg6[%c0_10, %c0_11], %13 {strides = array<i32>} : memref<8x128xf32, #tpu.memory_space<vmem>>, vector<8x128xf32>,
    return
  }
  func.func @transform_0(%arg0: i32) -> (i32, i32) {
    %c0_i32 = arith.constant 0 : i32
    %c0_i32_0 = arith.constant 0 : i32
    %c0_i32_1 = arith.constant 0 : i32
    return %c0_i32, %c0_i32_0 : i32, i32
  }
  func.func @transform_1(%arg0: i32) -> (i32, i32) {
    %c0_i32 = arith.constant 0 : i32
    %c0_i32_0 = arith.constant 0 : i32
    %c0_i32_1 = arith.constant 0 : i32
    return %c0_i32, %c0_i32_0 : i32, i32
  }
  func.func @transform_2(%arg0: i32) -> (i32, i32) {
    %c0_i32 = arith.constant 0 : i32
    %c0_i32_0 = arith.constant 0 : i32
    %c0_i32_1 = arith.constant 0 : i32
    return %c0_i32, %c0_i32_0 : i32, i32
  }
  func.func @transform_3(%arg0: i32) -> (i32, i32) {
    %c0_i32 = arith.constant 0 : i32
    %c0_i32_0 = arith.constant 0 : i32
    return %arg0, %c0_i32 : i32, i32
  }
  func.func @transform_4(%arg0: i32) -> (i32, i32) {
    %c0_i32 = arith.constant 0 : i32
    %c0_i32_0 = arith.constant 0 : i32
    return %c0_i32, %arg0 : i32, i32
  }
  func.func @transform_5(%arg0: i32) -> (i32, i32) {
    %c0_i32 = arith.constant 0 : i32
    %c0_i32_0 = arith.constant 0 : i32
    return %c0_i32, %arg0 : i32, i32
  }
}

</mosaic_0001>

<bundles_post_ra>
// kernel: tpu_custom_call.1
= control target key start
LH: loop header
LB: loop body
LE: loop exit
PB: predicated region body
PF: predicated region fallthrough
CT: control target
= control target key end

     0   :  { %11 = vsyncpa [#allocation3], 0  ;;  %s852_s0 = inlined_call_operand.vmem [shape: bf16[8,32], index: 0, kind: input, shape index: {}]   ;;  %s853_s1 = inlined_call_operand.vmem [shape: bf16[8,32], index: 1, kind: input, shape index: {}]   ;;  %s854_s2 = inlined_call_operand.vmem [shape: bf16[8,32], index: 2, kind: input, shape index: {}]   ;;  %s855_s3 = inlined_call_operand.vmem [shape: bf16[512,32], index: 3, kind: input, shape index: {}]   ;;  %s856_s4 = inlined_call_operand.hbm [shape: f32[8,512], index: 4, kind: output, shape index: {0}]   ;;  %s857_s5 = inlined_call_operand.hbm [shape: f32[8,512], index: 5, kind: output, shape index: {1}]  }
   0x1   :  { %13 = vsyncpa [#allocation3 + $0x1], 0 }
   0x2   :  { %14 = vsyncpa [#allocation5], 0 }
   0x3   :  { %16 = vsyncpa [#allocation5 + $0x1], 0  ;;  %s714_s18 = smov 0   ;;  %s716_s19 = smov 0  }
   0x4   :  { %s718_s20 = smov 0   ;;  %s720_s21 = smov 0  }
   0x5 LB: > { %s735_s22 = sadd.s32 4294967295, %s682_s21   ;;  %s488_s23 = sadd.s32 4294967294, %s682_s21   ;;  %s682_s21 = sphi %s720_s21, %s863_s21   ;;  %s678_s20 = sphi %s718_s20, %s862_s20   ;;  %s674_s19 = sphi %s716_s19, %s861_s19   ;;  %s670_s18 = sphi %s714_s18, %s860_s18  }
   0x6   : > { %s739_s24 = sadd.s32 1, %s682_s21   ;;  %s118_s25 = sadd.s32 1, %s678_s20 }
   0x7   : > { %s115_s26 = ssub.s32 %s682_s21, %s739_s24  ;;  %p128_p0 = scmp.ne.s32.totalorder %s678_s20, %s674_s19 }
   0x8   : > { %p116_p1 = scmp.eq.s32.totalorder %s115_s26, 0  ;;  %p129_p2 = scmp.eq.s32.totalorder %s735_s22, 3 }
   0x9   : > { %p134_p3 = scmp.ne.s32.totalorder %s674_s19, %s670_s18  ;;  %p135_p4 = scmp.eq.s32.totalorder %s488_s23, 3 }
   0xa   : > { %s750_s27 = scalar_select %p116_p1, %s678_s20, %s118_s25  }
   0xb   : > { %p752_p5 = por %p129_p2, %p128_p0  ;;  %p756_p6 = por %p135_p4, %p134_p3 }
   0xc   : > { %p491_p7 = scmp.ge.s32.totalorder %s682_s21, 1  ;;  %p197_p8 = scmp.lt.s32.totalorder %s682_s21, 5 }
   0xe   : > { %p198_p9 = pnand %p491_p7, %p197_p8 }
   0xf   : > { %s494_s30 = sshll.u32 (!%p198_p9), %s735_s22, 4  ;;  %s796_s16 = sand.u32 (!%p198_p9), 1, %s674_s19  }
  0x10   : > { %201 = sbr.rel (%p198_p9) target bundleno = 231 (0xe7), region = 36  ;;  %p231_p10 = scmp.lt.s32.totalorder (!%p198_p9), %s494_s30, 63 }
  0x11   : > { %s492_s17 = sshll.u32 (!%p198_p9), %s796_s16, 3  ;;  %s532_s23 = sshll.u32 (!%p198_p9), %s735_s22, 3 }
  0x12   : > { %s391_s8 = scalar_lea.hbm (!%p198_p9), %s857_s5, %s532_s23  ;;  %s229_s11 = scalar_lea.vmem (!%p198_p9), [#allocation4], %s492_s17 }
  0x13   : > { %s393_s12 = sshll.u32 (!%p198_p9), %s229_s11, 4  ;;  %s395_s14 = sshll.u32 (!%p198_p9), %s391_s8, 4  ;;  %s806_s12 = int_to_ptr.vmem [resolvable:$true] %s393_s12  ;;  %s808_s14 = int_to_ptr.hbm [resolvable:$true] %s395_s14 }
  0x14   : > { %s362_s22 = scalar_lea.sflag (!%p198_p9), [#allocation3], %s796_s16  ;;  %s608_s26 = scalar_lea.hbm (!%p198_p9), %s856_s4, 32 }
  0x15   : > { %s865_s30 = smov (!%p231_p10, %s494_s30), 63  ;;  %vm302_vm0 = vcmask 261120   ;;  %v252_v14 = vld [vmem:[%s852_s0] sm:$0xf] }
  0x16   : > { %s495_s6 = sshll.u32 %s865_s30, 2  ;;  %v254_v15 = vld [vmem:[%s853_s1] sm:$0xf]  ;;  %v253_v18 = vunpack.c.l.bf16 %v252_v14  ;;  %s377_s30 = scalar_lea.hbm %s856_s4, %s532_s23 }
  0x17   : > { %s766_s9 = scalar_lea.vmem %s855_s3, %s495_s6  ;;  %v256_v16 = vld [vmem:[%s854_s2] sm:$0xf]  ;;  %v255_v19 = vunpack.c.l.bf16 %v254_v15  ;;  %s381_s13 = sshll.u32 %s377_s30, 4  ;;  %s382_s13 = int_to_ptr.hbm [resolvable:$true] %s381_s13 }
  0x18   : > { %v543_v0 = vld [vmem:[%s766_s9 + $0x38] sm:$0xff]  ;;  %v542_v2 = vld [vmem:[%s766_s9 + $0x30] sm:$0xff]  ;;  %v541_v4 = vld [vmem:[%s766_s9 + $0x28] sm:$0xff]  ;;  %v257_v20 = vunpack.c.l.bf16 %v256_v16  ;;  %s602_s15 = sshra.s32 %s382_s13, 4  ;;  %s603_s15 = int_to_ptr.hbm [resolvable:$true] %s602_s15 }
  0x19   : > { %v328_v1 = vsel %vm302_vm0, %v543_v0, 0  ;;  %v325_v3 = vsel %vm302_vm0, %v542_v2, 0  ;;  %v322_v5 = vsel %vm302_vm0, %v541_v4, 0  ;;  %v540_v6 = vld [vmem:[%s766_s9 + $0x20] sm:$0xff]  ;;  %v539_v8 = vld [vmem:[%s766_s9 + $0x18] sm:$0xff]  ;;  %v538_v10 = vld [vmem:[%s766_s9 + $0x10] sm:$0xff]  ;;  %v258_v22 = vmul.f32 %v255_v19, %v253_v18  ;;  %p609_p0 = scmp.lt.s32.totalorder %s603_s15, %s856_s4 }
  0x1a   : > { %330 = vmatpush.bf16.xpose.msra.mxu0 %v328_v1  ;;  %347 = vmatpush.bf16.xpose.msra.mxu1 %v328_v1  ;;  %v319_v7 = vsel %vm302_vm0, %v540_v6, 0  ;;  %v316_v9 = vsel %vm302_vm0, %v539_v8, 0  ;;  %v313_v11 = vsel %vm302_vm0, %v538_v10, 0  ;;  %v537_v12 = vld [vmem:[%s766_s9 + $0x8] sm:$0xff]  ;;  %v536_v17 = vld [vmem:[%s766_s9] sm:$0xff]  ;;  %v260_v23 = vmul.f32 %v257_v20, %v255_v19  ;;  %s222_s9 = scalar_lea.vmem [#allocation2], %s492_s17 }
  0x1b   : > { %v310_v13 = vsel %vm302_vm0, %v537_v12, 0  ;;  %v307_v21 = vsel %vm302_vm0, %v536_v17, 0  ;;  %v259_v24 = vpack.c.bf16 %v258_v22, %v258_v22  ;;  %s379_s10 = sshll.u32 %s222_s9, 4  ;;  %s604_s23 = scalar_lea.hbm %s603_s15, 8  ;;  %s380_s10 = int_to_ptr.vmem [resolvable:$true] %s379_s10 }
  0x1c   : > { %v261_v25 = vpack.c.bf16 %v260_v23, %v260_v23  ;;  %p605_p11 = scmp.ne.s32.totalorder %s603_s15, %s604_s23  ;;  %p610_p1 = scmp.lt.s32.totalorder %s608_s26, %s604_s23 }
  0x1e   : > { %p606_p12 = pnand %p605_p11, %p752_p5  ;;  %p611_p2 = por %p610_p1, %p609_p0 }
  0x20   : > { %p607_p13 = pneg %p606_p12 }
  0x22   : > { %331 = vmatpush.bf16.xpose.msra.mxu0 %v325_v3  ;;  %348 = vmatpush.bf16.xpose.msra.mxu1 %v325_v3  ;;  %p612_p3 = pnand %p611_p2, %p607_p13 }
  0x2a   : > { %332 = vmatpush.bf16.xpose.msra.mxu0 %v322_v5  ;;  %349 = vmatpush.bf16.xpose.msra.mxu1 %v322_v5 }
  0x32   : > { %333 = vmatpush.bf16.xpose.msra.mxu0 %v319_v7  ;;  %350 = vmatpush.bf16.xpose.msra.mxu1 %v319_v7 }
  0x3a   : > { %334 = vmatpush.bf16.xpose.msra.mxu0 %v316_v9  ;;  %351 = vmatpush.bf16.xpose.msra.mxu1 %v316_v9 }
  0x42   : > { %335 = vmatpush.bf16.xpose.msra.mxu0 %v313_v11  ;;  %352 = vmatpush.bf16.xpose.msra.mxu1 %v313_v11 }
  0x4a   : > { %336 = vmatpush.bf16.xpose.msra.mxu0 %v310_v13  ;;  %353 = vmatpush.bf16.xpose.msra.mxu1 %v310_v13 }
  0x52   : > { %337 = vmatpush.bf16.xpose.msra.mxu0 %v307_v21  ;;  %354 = vmatpush.bf16.xpose.msra.mxu1 %v307_v21 }
  0x59   : > { %528 = vmatmul.msk.bf16.vlgmr.msra.gmra.mxu0 %vm302_vm0, %v259_v24  ;;  %529 = vmatmul.msk.bf16.vlgmr.msra.gmra.mxu1 %vm302_vm0, %v261_v25 }
  0xd6   : > { %v339_v26 = vpop.f32.mrf.mxu0  ;;  %v356_v27 = vpop.f32.mrf.mxu1 }
  0xd7   : > { %343 = vst [vmem:[%s222_s9] sm:$0xff] %v339_v26 }
  0xd8   : > { %360 = vst [vmem:[%s229_s11] sm:$0xff] %v356_v27 }
  0xd9   : > { %615 = shalt.err (!%p612_p3)
}
  0xda   : > { %544 = dma.vmem_to_hbm [thread:$0]  (%p752_p5), %s380_s10, 128, %s382_s13, %s362_s22  }
  0xdb   : > { %s367_s7 = scalar_lea.sflag [#allocation5], %s796_s16  ;;  %s630_s8 = sshra.s32 %s808_s14, 4  ;;  %s631_s8 = int_to_ptr.hbm [resolvable:$true] %s630_s8 }
  0xdc   : > { %s632_s9 = scalar_lea.hbm %s631_s8, 8  ;;  %s636_s23 = scalar_lea.hbm %s857_s5, 32 }
  0xdd   : > { %p633_p4 = scmp.ne.s32.totalorder %s631_s8, %s632_s9  ;;  %p637_p9 = scmp.lt.s32.totalorder %s631_s8, %s857_s5 }
  0xde   : > { %p638_p10 = scmp.lt.s32.totalorder %s636_s23, %s632_s9 }
  0xdf   : > { %p634_p7 = pnand %p633_p4, %p752_p5 }
  0xe0   : > { %p639_p11 = por %p638_p10, %p637_p9 }
  0xe1   : > { %p635_p8 = pneg %p634_p7 }
  0xe3   : > { %p640_p12 = pnand %p639_p11, %p635_p8 }
  0xe5   : > { %643 = shalt.err (!%p640_p12)
}
  0xe6   : > { %545 = dma.vmem_to_hbm [thread:$0]  (%p752_p5), %s806_s12, 128, %s808_s14, %s367_s7   ;;  %v341_v28 = vpop.f32.mrf.mxu0  ;;  %v358_v29 = vpop.f32.mrf.mxu1 }
  0xe7 PF: > { %p555_p13 = scmp.ge.s32.totalorder %s682_s21, 2  ;;  %s407_s16 = sand.u32 1, %s670_s18  }
  0xe8   : > { %s408_s10 = scalar_lea.sflag [#allocation3], %s407_s16 }
  0xe9   : > { %p549_p0 = pnand %p555_p13, %p756_p6 }
  0xeb   : > { %p550_p1 = pneg %p549_p0 }
  0xed   : > { %661 = dma.done.wait (%p550_p1), %s408_s10, 128  }
  0xee   : > { %663 = vsyncadd (%p550_p1), %s408_s10, 4294967168  ;;  %s418_s13 = scalar_lea.sflag [#allocation5], %s407_s16 }
  0xef   : > { %665 = dma.done.wait (%p550_p1), %s418_s13, 128  }
  0xf0   : > { %667 = vsyncadd (%p550_p1), %s418_s13, 4294967168  ;;  %p19_p5 = scmp.ge.s32.totalorder %s739_s24, 6   ;;  %s860_s18 = smov %s674_s19 }
  0xf1   : > { %s861_s19 = smov %s678_s20  ;;  %s862_s20 = smov %s750_s27 }
  0xf2   : > { %s863_s21 = smov %s739_s24  ;;  %21 = sbr.rel (!%p19_p5) target bundleno = 5 (0x5), region = 88 }
  0xf7   :  { %424 = vsyncpa [#allocation3], 1 }
  0xf8   :  { %426 = vsyncpa [#allocation3 + $0x1], 1 }
  0xf9   :  { %427 = vsyncpa [#allocation5], 1 }
  0xfa   :  { %429 = vsyncpa [#allocation5 + $0x1], 1 }

</bundles_post_ra>
